<compile_context>
chip_gen: v6e
topology: v6e:2x2x1
jax: 0.10.0
libtpu: 0.0.40
codegen_flags: <defaults>
</compile_context>

<pallas_src>
import functools

import jax
import jax.numpy as jnp
from jax.experimental import pallas as pl
from jax.experimental.pallas import tpu as pltpu

IN_FEATURES = 100
HIDDEN = 100
OUT_FEATURES = 100

F_PAD = 128        # lane-dense feature width
TILE_B_MAX = 512   # batch tile; 2*(512*128*4B) in/out double-buffers + ~128KiB
                   # resident weights fits comfortably in VMEM on v5e/v6e/v7x


def _round_up(x, m):
    return (x + m - 1) // m * m


def toy_inner_kernel(x_ref, w1t_ref, b1_ref, w2t_ref, b2_ref, o_ref):
    # x_ref:  (TILE_B, 128) VMEM batch tile
    # w1t_ref:(128, 128)    VMEM, resident across grid (in x out, zero-padded)
    # b1_ref: (1, 128)      VMEM, resident (zero-padded tail)
    # w2t_ref:(128, 128)    VMEM, resident
    # b2_ref: (1, 128)      VMEM, resident
    # o_ref:  (TILE_B, 128) VMEM, lane-dense unmasked store
    x = x_ref[...]
    h = jnp.dot(x, w1t_ref[...], preferred_element_type=jnp.float32) + b1_ref[...]
    y = jnp.dot(h, w2t_ref[...], preferred_element_type=jnp.float32) + b2_ref[...]
    o_ref[...] = y.astype(o_ref.dtype)


@functools.partial(jax.jit)
def toy_inner_model(x, w1, b1, w2, b2):
    """x: (B, 100) f32. w1/w2: (out, in) like PyTorch Linear. b1/b2: (out,)."""
    B = x.shape[0]

    # Batch tiling: pad B up so the grid divides evenly; last-two-dims of each
    # block are (tile_b, 128) with tile_b a multiple of 8.
    b_pad = _round_up(max(B, 8), 8)
    tile_b = min(TILE_B_MAX, b_pad)
    b_pad = _round_up(b_pad, tile_b)
    grid = (b_pad // tile_b,)

    # Layout plumbing (fused under jit): pre-transpose weights to (in, out),
    # zero-pad everything to 128-dense feature dims, lift biases to (1, 128).
    x_p = jnp.zeros((b_pad, F_PAD), x.dtype).at[:B, :IN_FEATURES].set(x)
    w1t = jnp.zeros((F_PAD, F_PAD), jnp.float32).at[:IN_FEATURES, :HIDDEN].set(w1.T)
    w2t = jnp.zeros((F_PAD, F_PAD), jnp.float32).at[:HIDDEN, :OUT_FEATURES].set(w2.T)
    b1_p = jnp.zeros((1, F_PAD), jnp.float32).at[0, :HIDDEN].set(b1)
    b2_p = jnp.zeros((1, F_PAD), jnp.float32).at[0, :OUT_FEATURES].set(b2)

    batch_spec = pl.BlockSpec((tile_b, F_PAD), lambda i: (i, 0))
    weight_spec = pl.BlockSpec((F_PAD, F_PAD), lambda i: (0, 0))
    bias_spec = pl.BlockSpec((1, F_PAD), lambda i: (0, 0))

    out_padded = pl.pallas_call(
        toy_inner_kernel,
        out_shape=jax.ShapeDtypeStruct((b_pad, F_PAD), x.dtype),
        grid=grid,
        in_specs=[batch_spec, weight_spec, bias_spec, weight_spec, bias_spec],
        out_specs=batch_spec,
        compiler_params=pltpu.CompilerParams(
            dimension_semantics=("parallel",),
        ),
    )(x_p, w1t, b1_p, w2t, b2_p)

    # Slice padding off (fused under jit).
    return out_padded[:B, :OUT_FEATURES]


def reference(x, w1, b1, w2, b2):
    h = x @ w1.T + b1
    return h @ w2.T + b2


if __name__ == "__main__":
    key = jax.random.PRNGKey(0)
    k_x, k_w1, k_b1, k_w2, k_b2 = jax.random.split(key, 5)

    B = 8
    x = jax.random.normal(k_x, (B, IN_FEATURES), dtype=jnp.float32)

    # Deterministic parameter init, PyTorch-Linear-like shapes (out, in) and (out,)
    bound = 1.0 / (IN_FEATURES ** 0.5)
    w1 = jax.random.uniform(k_w1, (HIDDEN, IN_FEATURES), jnp.float32, -bound, bound)
    b1 = jax.random.uniform(k_b1, (HIDDEN,), jnp.float32, -bound, bound)
    w2 = jax.random.uniform(k_w2, (OUT_FEATURES, HIDDEN), jnp.float32, -bound, bound)
    b2 = jax.random.uniform(k_b2, (OUT_FEATURES,), jnp.float32, -bound, bound)

    y = toy_inner_model(x, w1, b1, w2, b2)
    y = jax.block_until_ready(y)

    y_ref = reference(x, w1, b1, w2, b2)
    assert y.shape == (B, OUT_FEATURES)
    assert jnp.allclose(y, y_ref, atol=1e-4, rtol=1e-4), "mismatch vs reference"

    print("KERNEL_OK")
</pallas_src>

<mosaic_0001>
module attributes {stable_mosaic.version = 11 : i64} {
  func.func @toy_inner_kernel(%arg0: i32, %arg1: memref<8x128xf32, #tpu.memory_space<vmem>>, %arg2: memref<128x128xf32, #tpu.memory_space<vmem>>, %arg3: memref<1x128xf32, #tpu.memory_space<vmem>>, %arg4: memref<128x128xf32, #tpu.memory_space<vmem>>, %arg5: memref<1x128xf32, #tpu.memory_space<vmem>>, %arg6: memref<8x128xf32, #tpu.memory_space<vmem>>) attributes {dimension_semantics = [#tpu.dimension_semantics<parallel>], iteration_bounds = array<i64: 1>, scalar_prefetch = 0 : i64, scratch_operands = 0 : i64, tpu.core_type = #tpu.core_type<tc>, window_params = [{transform_indices = @transform_0, window_bounds = array<i64: 8, 128>}, {pipeline_mode = #tpu.pipeline_mode<synchronous>, transform_indices = @transform_1, window_bounds = array<i64: 128, 128>}, {pipeline_mode = #tpu.pipeline_mode<synchronous>, transform_indices = @transform_2, window_bounds = array<i64: 1, 128>}, {pipeline_mode = #tpu.pipeline_mode<synchronous>, transform_indices = @transform_3, window_bounds = array<i64: 128, 128>}, {pipeline_mode = #tpu.pipeline_mode<synchronous>, transform_indices = @transform_4, window_bounds = array<i64: 1, 128>}, {transform_indices = @transform_5, window_bounds = array<i64: 8, 128>}]} {
    %c0 = arith.constant 0 : index
    %c0_0 = arith.constant 0 : index
    %0 = vector.load %arg1[%c0, %c0_0] : memref<8x128xf32, #tpu.memory_space<vmem>>, vector<8x128xf32>
    %c0_1 = arith.constant 0 : index
    %c0_2 = arith.constant 0 : index
    %1 = vector.load %arg2[%c0_1, %c0_2] : memref<128x128xf32, #tpu.memory_space<vmem>>, vector<128x128xf32>
    %cst = arith.constant dense<0.000000e+00> : vector<8x128xf32>
    %2 = tpu.matmul %0, %1, %cst {dimension_numbers = #tpu.dot_dimension_numbers<[1], [0], [0], [1], [0, 0, 1, 1], [], []>} : vector<8x128xf32>, vector<128x128xf32>, vector<8x128xf32> -> vector<8x128xf32>
    %c0_3 = arith.constant 0 : index
    %c0_4 = arith.constant 0 : index
    %3 = vector.load %arg3[%c0_3, %c0_4] : memref<1x128xf32, #tpu.memory_space<vmem>>, vector<1x128xf32>
    %4 = vector.broadcast %3 : vector<1x128xf32> to vector<8x128xf32>
    %5 = arith.addf %2, %4 : vector<8x128xf32>
    %c0_5 = arith.constant 0 : index
    %c0_6 = arith.constant 0 : index
    %6 = vector.load %arg4[%c0_5, %c0_6] : memref<128x128xf32, #tpu.memory_space<vmem>>, vector<128x128xf32>
    %cst_7 = arith.constant dense<0.000000e+00> : vector<8x128xf32>
    %7 = tpu.matmul %5, %6, %cst_7 {dimension_numbers = #tpu.dot_dimension_numbers<[1], [0], [0], [1], [0, 0, 1, 1], [], []>} : vector<8x128xf32>, vector<128x128xf32>, vector<8x128xf32> -> vector<8x128xf32>
    %c0_8 = arith.constant 0 : index
    %c0_9 = arith.constant 0 : index
    %8 = vector.load %arg5[%c0_8, %c0_9] : memref<1x128xf32, #tpu.memory_space<vmem>>, vector<1x128xf32>
    %9 = vector.broadcast %8 : vector<1x128xf32> to vector<8x128xf32>
    %10 = arith.addf %7, %9 : vector<8x128xf32>
    %c0_10 = arith.constant 0 : index
    %c0_11 = arith.constant 0 : index
    %11 = vector.load %arg6[%c0_10, %c0_11] : memref<8x128xf32, #tpu.memory_space<vmem>>, vector<8x128xf32>
    tpu.vector_store %arg6[%c0_10, %c0_11], %10 {strides = array<i32>} : memref<8x128xf32, #tpu.memory_space<vmem>>, vector<8x128xf32>,
    return
  }
  func.func @transform_0(%arg0: i32) -> (i32, i32) {
    %c0_i32 = arith.constant 0 : i32
    %c0_i32_0 = arith.constant 0 : i32
    return %arg0, %c0_i32 : i32, i32
  }
  func.func @transform_1(%arg0: i32) -> (i32, i32) {
    %c0_i32 = arith.constant 0 : i32
    %c0_i32_0 = arith.constant 0 : i32
    %c0_i32_1 = arith.constant 0 : i32
    return %c0_i32, %c0_i32_0 : i32, i32
  }
  func.func @transform_2(%arg0: i32) -> (i32, i32) {
    %c0_i32 = arith.constant 0 : i32
    %c0_i32_0 = arith.constant 0 : i32
    %c0_i32_1 = arith.constant 0 : i32
    return %c0_i32, %c0_i32_0 : i32, i32
  }
  func.func @transform_3(%arg0: i32) -> (i32, i32) {
    %c0_i32 = arith.constant 0 : i32
    %c0_i32_0 = arith.constant 0 : i32
    %c0_i32_1 = arith.constant 0 : i32
    return %c0_i32, %c0_i32_0 : i32, i32
  }
  func.func @transform_4(%arg0: i32) -> (i32, i32) {
    %c0_i32 = arith.constant 0 : i32
    %c0_i32_0 = arith.constant 0 : i32
    %c0_i32_1 = arith.constant 0 : i32
    return %c0_i32, %c0_i32_0 : i32, i32
  }
  func.func @transform_5(%arg0: i32) -> (i32, i32) {
    %c0_i32 = arith.constant 0 : i32
    %c0_i32_0 = arith.constant 0 : i32
    return %arg0, %c0_i32 : i32, i32
  }
}

</mosaic_0001>

<bundles_post_ra>
// kernel: toy_inner_model.1
= control target key start
LH: loop header
LB: loop body
LE: loop exit
PB: predicated region body
PF: predicated region fallthrough
CT: control target
= control target key end

     0   :  { %v354_v1 = vmov 0.0   ;;  %vm355_vm0 = vmmov 0   ;;  %s529_s0 = inlined_call_operand.vmem [shape: f32[8,128], index: 0, kind: input, shape index: {}]   ;;  %s530_s1 = inlined_call_operand.vmem [shape: f32[128,128], index: 1, kind: input, shape index: {}]   ;;  %s531_s2 = inlined_call_operand.vmem [shape: f32[1,128], index: 2, kind: input, shape index: {}]   ;;  %s532_s3 = inlined_call_operand.vmem [shape: f32[128,128], index: 3, kind: input, shape index: {}]   ;;  %s533_s4 = inlined_call_operand.vmem [shape: f32[1,128], index: 4, kind: input, shape index: {}]   ;;  %s534_s5 = inlined_call_operand.hbm [shape: f32[8,128], index: 5, kind: output, shape index: {}]  }
   0x1   :  { %v37_v0 = vld [vmem:[%s530_s1 + $0x78] sm:$0xff]  ;;  %259 = vmatprep.subr.mxu0 %v354_v1  ;;  %v36_v2 = vld [vmem:[%s530_s1 + $0x70] sm:$0xff]  ;;  %291 = vmatprep.mubr.msk.f32.mxu0 %vm355_vm0, %v354_v1  ;;  %v35_v3 = vld [vmem:[%s530_s1 + $0x68] sm:$0xff] }
   0x2   :  { %260 = vmatpush3.msra.mxu0 %v37_v0  ;;  %294 = vmatprep.subr.mxu1 %v354_v1  ;;  %v34_v4 = vld [vmem:[%s530_s1 + $0x60] sm:$0xff]  ;;  %v130_v5 = vld [vmem:[%s532_s3 + $0x78] sm:$0xff]  ;;  %v129_v6 = vld [vmem:[%s532_s3 + $0x70] sm:$0xff] }
   0x3   :  { %261 = vmatprep.subr.mxu0 %v354_v1  ;;  %326 = vmatprep.mubr.msk.f32.mxu1 %vm355_vm0, %v354_v1  ;;  %v33_v7 = vld [vmem:[%s530_s1 + $0x58] sm:$0xff]  ;;  %v128_v8 = vld [vmem:[%s532_s3 + $0x68] sm:$0xff]  ;;  %v32_v9 = vld [vmem:[%s530_s1 + $0x50] sm:$0xff] }
   0x4   :  { %262 = vmatpush3.msra.mxu0 %v36_v2  ;;  %295 = vmatpush3.msra.mxu1 %v130_v5  ;;  %v127_v10 = vld [vmem:[%s532_s3 + $0x60] sm:$0xff] }
   0x5   :  { %263 = vmatprep.subr.mxu0 %v354_v1  ;;  %296 = vmatprep.subr.mxu1 %v354_v1 }
   0x6   :  { %264 = vmatpush3.msra.mxu0 %v35_v3  ;;  %297 = vmatpush3.msra.mxu1 %v129_v6 }
   0x7   :  { %265 = vmatprep.subr.mxu0 %v354_v1  ;;  %298 = vmatprep.subr.mxu1 %v354_v1 }
   0x8   :  { %266 = vmatpush3.msra.mxu0 %v34_v4  ;;  %299 = vmatpush3.msra.mxu1 %v128_v8 }
   0x9   :  { %267 = vmatprep.subr.mxu0 %v354_v1 }
   0xa   :  { %268 = vmatpush3.msra.mxu0 %v33_v7 }
   0xb   :  { %10 = vsyncpa [#allocation3], 0  ;;  %269 = vmatprep.subr.mxu0 %v354_v1  ;;  %v31_v11 = vld [vmem:[%s530_s1 + $0x48] sm:$0xff]  ;;  %300 = vmatprep.subr.mxu1 %v354_v1  ;;  %v126_v12 = vld [vmem:[%s532_s3 + $0x58] sm:$0xff]  ;;  %s356_s11 = smov [#allocation2]  }
   0xc   :  { %270 = vmatpush3.msra.mxu0 %v32_v9  ;;  %301 = vmatpush3.msra.mxu1 %v127_v10  ;;  %v30_v13 = vld [vmem:[%s530_s1 + $0x40] sm:$0xff]  ;;  %v125_v14 = vld [vmem:[%s532_s3 + $0x50] sm:$0xff]  ;;  %v29_v15 = vld [vmem:[%s530_s1 + $0x38] sm:$0xff]  ;;  %s215_s12 = sshll.u32 %s356_s11, 4  ;;  %s216_s12 = int_to_ptr.vmem [resolvable:$true] %s215_s12 }
   0xd   :  { %271 = vmatprep.subr.mxu0 %v354_v1  ;;  %302 = vmatprep.subr.mxu1 %v354_v1  ;;  %v124_v16 = vld [vmem:[%s532_s3 + $0x48] sm:$0xff]  ;;  %v28_v17 = vld [vmem:[%s530_s1 + $0x30] sm:$0xff]  ;;  %v123_v18 = vld [vmem:[%s532_s3 + $0x40] sm:$0xff]  ;;  %p337_p1 = scmp.lt.s32.totalorder %s216_s12, %s216_s12 }
   0xe   :  { %272 = vmatpush3.msra.mxu0 %v31_v11  ;;  %303 = vmatpush3.msra.mxu1 %v126_v12  ;;  %v27_v19 = vld [vmem:[%s530_s1 + $0x28] sm:$0xff]  ;;  %v122_v20 = vld [vmem:[%s532_s3 + $0x38] sm:$0xff]  ;;  %v26_v21 = vld [vmem:[%s530_s1 + $0x20] sm:$0xff] }
   0xf   :  { %273 = vmatprep.subr.mxu0 %v354_v1  ;;  %304 = vmatprep.subr.mxu1 %v354_v1  ;;  %v121_v22 = vld [vmem:[%s532_s3 + $0x30] sm:$0xff]  ;;  %v25_v23 = vld [vmem:[%s530_s1 + $0x18] sm:$0xff]  ;;  %v120_v24 = vld [vmem:[%s532_s3 + $0x28] sm:$0xff] }
  0x10   :  { %274 = vmatpush3.msra.mxu0 %v30_v13  ;;  %305 = vmatpush3.msra.mxu1 %v125_v14  ;;  %v24_v25 = vld [vmem:[%s530_s1 + $0x10] sm:$0xff]  ;;  %v119_v26 = vld [vmem:[%s532_s3 + $0x20] sm:$0xff]  ;;  %v23_v27 = vld [vmem:[%s530_s1 + $0x8] sm:$0xff] }
  0x11   :  { %275 = vmatprep.subr.mxu0 %v354_v1  ;;  %306 = vmatprep.subr.mxu1 %v354_v1  ;;  %v118_v28 = vld [vmem:[%s532_s3 + $0x18] sm:$0xff]  ;;  %v22_v29 = vld [vmem:[%s530_s1] sm:$0xff]  ;;  %v117_v30 = vld [vmem:[%s532_s3 + $0x10] sm:$0xff] }
  0x12   :  { %276 = vmatpush3.msra.mxu0 %v29_v15  ;;  %307 = vmatpush3.msra.mxu1 %v124_v16  ;;  %v21_v31 = vld [vmem:[%s529_s0] sm:$0xff]  ;;  %v116_v32 = vld [vmem:[%s532_s3 + $0x8] sm:$0xff] }
  0x13   :  { %277 = vmatprep.subr.mxu0 %v354_v1  ;;  %308 = vmatprep.subr.mxu1 %v354_v1  ;;  %v115_v33 = vld [vmem:[%s532_s3] sm:$0xff]  ;;  %s332_s3 = scalar_lea.vmem %s216_s12, 128 }
  0x14   :  { %278 = vmatpush3.msra.mxu0 %v28_v17  ;;  %309 = vmatpush3.msra.mxu1 %v123_v18  ;;  %v223_v34 = vld [vmem:[%s531_s2] ss:$0 sm:$0xff]  ;;  %p333_p0 = scmp.ne.s32.totalorder %s216_s12, %s332_s3  ;;  %p338_p2 = scmp.lt.s32.totalorder %s332_s3, %s332_s3 }
  0x15   :  { %279 = vmatprep.subr.mxu0 %v354_v1  ;;  %310 = vmatprep.subr.mxu1 %v354_v1  ;;  %v224_v38 = vld [vmem:[%s533_s4] ss:$0 sm:$0xff] }
  0x16   :  { %280 = vmatpush3.msra.mxu0 %v27_v19  ;;  %311 = vmatpush3.msra.mxu1 %v122_v20  ;;  %p339_p3 = por %p338_p2, %p337_p1 }
  0x17   :  { %281 = vmatprep.subr.mxu0 %v354_v1  ;;  %312 = vmatprep.subr.mxu1 %v354_v1 }
  0x18   :  { %282 = vmatpush3.msra.mxu0 %v26_v21  ;;  %313 = vmatpush3.msra.mxu1 %v121_v22  ;;  %p340_p4 = pnand %p339_p3, %p333_p0 }
  0x19   :  { %283 = vmatprep.subr.mxu0 %v354_v1  ;;  %314 = vmatprep.subr.mxu1 %v354_v1 }
  0x1a   :  { %284 = vmatpush3.msra.mxu0 %v25_v23  ;;  %315 = vmatpush3.msra.mxu1 %v120_v24 }
  0x1b   :  { %285 = vmatprep.subr.mxu0 %v354_v1  ;;  %316 = vmatprep.subr.mxu1 %v354_v1 }
  0x1c   :  { %286 = vmatpush3.msra.mxu0 %v24_v25  ;;  %317 = vmatpush3.msra.mxu1 %v119_v26 }
  0x1d   :  { %287 = vmatprep.subr.mxu0 %v354_v1  ;;  %318 = vmatprep.subr.mxu1 %v354_v1 }
  0x1e   :  { %288 = vmatpush3.msra.mxu0 %v23_v27  ;;  %319 = vmatpush3.msra.mxu1 %v118_v28 }
  0x1f   :  { %289 = vmatprep.subr.mxu0 %v354_v1  ;;  %320 = vmatprep.subr.mxu1 %v354_v1 }
  0x20   :  { %290 = vmatpush3.msra.mxu0 %v22_v29  ;;  %321 = vmatpush3.msra.mxu1 %v117_v30 }
  0x21   :  { %292 = vmatmul.mubr.f32.vlgmr.msra.gmra.mxu0 %v21_v31  ;;  %322 = vmatprep.subr.mxu1 %v354_v1 }
  0x22   :  { %323 = vmatpush3.msra.mxu1 %v116_v32 }
  0x23   :  { %324 = vmatprep.subr.mxu1 %v354_v1 }
  0x24   :  { %325 = vmatpush3.msra.mxu1 %v115_v33 }
  0xe1   :  { %v111_v35 = vpop.f32.mrf.mxu0 }
  0xe2   :  { %v112_v36 = vadd.f32 %v223_v34, %v111_v35 }
  0xe3   :  { %v293_v37 = vpop.f32.mrf.mxu0 }
  0xe4   :  { %327 = vmatmul.mubr.f32.vlgmr.msra.gmra.mxu1 %v112_v36 }
 0x1a4   :  { %v204_v39 = vpop.f32.mrf.mxu1 }
 0x1a5   :  { %v205_v40 = vadd.f32 %v224_v38, %v204_v39 }
 0x1a6   :  { %v328_v41 = vpop.f32.mrf.mxu1 }
 0x1a7   :  { %208 = vst [vmem:[#allocation2] sm:$0xff] %v205_v40 }
 0x1a8   :  { %343 = shalt.err (!%p340_p4)
}
 0x1a9   :  { %218 = dma.vmem_to_hbm [thread:$0]  %s216_s12, 128, %s534_s5, [#allocation3]  }
 0x1aa   :  { %352 = dma.done.wait [#allocation3], 128  }
 0x1ab   :  { %353 = vsyncadd [#allocation3], 4294967168 }
 0x1ac   :  { %222 = vsyncpa [#allocation3], 1 }

</bundles_post_ra>
